<compile_context>
chip_gen: v7x
topology: tpu7x:2x2x1
jax: 0.10.0
libtpu: 0.0.40
codegen_flags: <defaults>
</compile_context>

<pallas_src>
import jax
import jax.numpy as jnp
from jax.experimental import pallas as pl
from jax.experimental.pallas import tpu as pltpu


def _copy_kernel(x_ref, o_ref):
    # Pure pass-through: copy the current VMEM tile of the input to the output.
    o_ref[...] = x_ref[...]


_LANE = 128
_SUBLANE = 8
_PAD_UNIT = _SUBLANE * _LANE          # 1024: one full f32 vreg worth of elements
_MAX_WIDTH = 2048                     # lanes per row (16 full f32 vregs per sublane row)
_MIN_GRID_STEPS = 8                   # >= max(4, 2*num_TCs): lets in/out DMAs pipeline


def _target_block_bytes():
    """Per-TPU-generation block-byte target (+ optional explicit VMEM limit)."""
    try:
        kind = jax.devices()[0].device_kind.lower()
    except Exception:  # pragma: no cover - defensive
        kind = ""
    if "v5" in kind:
        # v5e scoped-VMEM default is 16 MiB; 2 MiB blocks (8 MiB resident) are safe
        # and per-step overhead is already <10% at ~0.82 TB/s.
        return 2 * 1024 * 1024, None
    if "v6" in kind:
        # 4 MiB blocks -> 16 MiB resident, under the 32 MiB scoped default.
        return 4 * 1024 * 1024, None
    if "7" in kind:
        # v7x: 3.2 TB/s HBM makes per-step overhead ~25% at 2 MiB; use 8 MiB blocks
        # (32 MiB resident) and raise the scoped limit to 48 MiB (physical is 64 MiB).
        return 8 * 1024 * 1024, 48 * 1024 * 1024
    # Unknown generation: conservative middle ground.
    return 4 * 1024 * 1024, None


def _pick_width(total):
    """Largest power-of-two multiple of 128 (<= _MAX_WIDTH) dividing `total`."""
    width = _LANE
    while width * 2 <= _MAX_WIDTH and total % (width * 2) == 0:
        width *= 2
    return width


def _pick_tile_rows(rows, width, itemsize, target_block_bytes):
    """Row-tile size: big enough to amortize per-step overhead, small enough that
    the grid has >= _MIN_GRID_STEPS steps (when rows allow) so DMAs pipeline."""
    row_bytes = max(width * itemsize, 1)
    tr = max(1, target_block_bytes // row_bytes)
    tr = min(tr, max(1, pl.cdiv(rows, _MIN_GRID_STEPS)))
    if tr >= rows:
        return rows  # full extent: no divisibility constraint
    # Second-minor block dim must be a multiple of 8 unless it is the full extent.
    tr = max(_SUBLANE, (tr // _SUBLANE) * _SUBLANE)
    return min(tr, rows)


def _pallas_copy_2d(x2, tile_rows, vmem_limit_bytes):
    rows, width = x2.shape
    grid = (pl.cdiv(rows, tile_rows),)
    nbytes = x2.size * jnp.dtype(x2.dtype).itemsize
    compiler_kwargs = dict(
        dimension_semantics=("parallel",),  # shards the copy across TCs on v7x
    )
    if vmem_limit_bytes is not None:
        compiler_kwargs["vmem_limit_bytes"] = vmem_limit_bytes
    return pl.pallas_call(
        _copy_kernel,
        out_shape=jax.ShapeDtypeStruct((rows, width), x2.dtype),
        grid=grid,
        in_specs=[pl.BlockSpec((tile_rows, width), lambda i: (i, 0))],
        out_specs=pl.BlockSpec((tile_rows, width), lambda i: (i, 0)),
        compiler_params=pltpu.CompilerParams(**compiler_kwargs),
        cost_estimate=pl.CostEstimate(
            flops=0, transcendentals=0, bytes_accessed=2 * int(nbytes)
        ),
    )(x2)


def max_forward(x: jax.Array, *, force_pallas: bool = False) -> jax.Array:
    """Identity forward pass (matches Max.forward).

    Default path returns `x` directly (zero HBM traffic — the optimal identity).
    With force_pallas=True the value is round-tripped through a lane-dense Pallas
    copy kernel (same shape, dtype and values).
    """
    if not force_pallas:
        return x

    total = int(x.size)
    if total == 0:
        return x  # empty tensor: nothing to copy

    itemsize = jnp.dtype(x.dtype).itemsize
    target_block_bytes, vmem_limit_bytes = _target_block_bytes()

    if total % _LANE == 0:
        # Lane-dense path: flatten to (rows, width) with width a multiple of 128.
        width = _pick_width(total)
        rows = total // width
        tile_rows = _pick_tile_rows(rows, width, itemsize, target_block_bytes)
        x2 = jnp.reshape(x, (rows, width))
        out = _pallas_copy_2d(x2, tile_rows, vmem_limit_bytes)
        return jnp.reshape(out, x.shape)

    # Fallback: pad the flattened length up to a multiple of 8*128 so every store
    # is a full unmasked 128-lane vst, copy the padded slab, then slice back.
    padded_total = ((total + _PAD_UNIT - 1) // _PAD_UNIT) * _PAD_UNIT
    width = _pick_width(padded_total)
    rows = padded_total // width
    tile_rows = _pick_tile_rows(rows, width, itemsize, target_block_bytes)
    flat = jnp.reshape(x, (total,))
    flat = jnp.pad(flat, (0, padded_total - total))
    x2 = jnp.reshape(flat, (rows, width))
    out = _pallas_copy_2d(x2, tile_rows, vmem_limit_bytes)
    return jnp.reshape(jnp.reshape(out, (padded_total,))[:total], x.shape)


if __name__ == "__main__":
    key = jax.random.PRNGKey(0)

    # Spec-consistent NCHW input: batch=2, channels=4, 16x16 spatial.
    x = jax.random.normal(key, (2, 4, 16, 16), dtype=jnp.float32)

    # Default (production) path: identity short-circuit, zero HBM traffic.
    y_fast = max_forward(x)
    assert y_fast.shape == x.shape and y_fast.dtype == x.dtype
    assert bool(jnp.all(y_fast == x))

    # Pallas copy path on the spec input (lane-dense, single-block grid).
    y = jax.block_until_ready(max_forward(x, force_pallas=True))
    assert y.shape == x.shape and y.dtype == x.dtype
    assert bool(jnp.all(y == x))

    # Pallas copy path with a multi-step grid (exercises pipelining / row tiling).
    key2 = jax.random.PRNGKey(1)
    x_big = jax.random.normal(key2, (8, 64, 128), dtype=jnp.float32)
    y_big = jax.block_until_ready(max_forward(x_big, force_pallas=True))
    assert y_big.shape == x_big.shape and bool(jnp.all(y_big == x_big))

    # Pallas copy path on a non-multiple-of-128 shape (exercises the padded
    # lane-dense fallback instead of masked narrow stores).
    key3 = jax.random.PRNGKey(2)
    x_odd = jax.random.normal(key3, (2, 3, 15, 15), dtype=jnp.float32)
    y_odd = jax.block_until_ready(max_forward(x_odd, force_pallas=True))
    assert y_odd.shape == x_odd.shape and bool(jnp.all(y_odd == x_odd))

    print("KERNEL_OK")
</pallas_src>

<mosaic_0001>
module attributes {stable_mosaic.version = 11 : i64} {
  func.func @_copy_kernel(%arg0: i32, %arg1: memref<1x2048xf32, #tpu.memory_space<vmem>>, %arg2: memref<1x2048xf32, #tpu.memory_space<vmem>>) attributes {dimension_semantics = [#tpu.dimension_semantics<parallel>], iteration_bounds = array<i64: 1>, scalar_prefetch = 0 : i64, scratch_operands = 0 : i64, tpu.core_type = #tpu.core_type<tc>, window_params = [{transform_indices = @transform_0, window_bounds = array<i64: 1, 2048>}, {transform_indices = @transform_1, window_bounds = array<i64: 1, 2048>}]} {
    %c0 = arith.constant 0 : index
    %c0_0 = arith.constant 0 : index
    %0 = vector.load %arg1[%c0, %c0_0] : memref<1x2048xf32, #tpu.memory_space<vmem>>, vector<1x2048xf32>
    %c0_1 = arith.constant 0 : index
    %c0_2 = arith.constant 0 : index
    %1 = vector.load %arg2[%c0_1, %c0_2] : memref<1x2048xf32, #tpu.memory_space<vmem>>, vector<1x2048xf32>
    tpu.vector_store %arg2[%c0_1, %c0_2], %0 {strides = array<i32>} : memref<1x2048xf32, #tpu.memory_space<vmem>>, vector<1x2048xf32>,
    return
  }
  func.func @transform_0(%arg0: i32) -> (i32, i32) {
    %c0_i32 = arith.constant 0 : i32
    %c0_i32_0 = arith.constant 0 : i32
    return %arg0, %c0_i32 : i32, i32
  }
  func.func @transform_1(%arg0: i32) -> (i32, i32) {
    %c0_i32 = arith.constant 0 : i32
    %c0_i32_0 = arith.constant 0 : i32
    return %arg0, %c0_i32 : i32, i32
  }
}

</mosaic_0001>

<bundles_post_ra>
// kernel: tpu_custom_call.1
= control target key start
LH: loop header
LB: loop body
LE: loop exit
PB: predicated region body
PF: predicated region fallthrough
CT: control target
= control target key end

     0   :  { %6 = vsyncpa [#allocation3], 0  ;;  %s126_s0 = inlined_call_operand.hbm [shape: f32[1,2048], index: 0, kind: input, shape index: {}]   ;;  %s127_s1 = inlined_call_operand.hbm [shape: f32[1,2048], index: 1, kind: output, shape index: {}]  }
   0x1   :  { %7 = vsyncpa [#allocation4], 0  ;;  %s90_s6 = smov [#allocation2]   ;;  %s42_s10 = scalar_lea.hbm %s126_s0, 256 }
   0x2   :  { %s14_s7 = sshll.u32 %s90_s6, 4  ;;  %p43_p0 = scmp.ne.s32.totalorder %s126_s0, %s42_s10  ;;  %s15_s7 = int_to_ptr.vmem [resolvable:$true] %s14_s7 }
   0x3   :  { %p46_p1 = scmp.lt.u32.totalorder %s42_s10, %s126_s0 }
   0x5   :  { %p48_p2 = pnand %p46_p1, %p43_p0 }
   0x7   :  { %51 = shalt.err (!%p48_p2)
}
   0x8   :  { %s52_s15 = scalar_lea.vmem %s15_s7, 256  ;;  %p57_p4 = scmp.lt.s32.totalorder %s15_s7, %s15_s7 }
   0x9   :  { %p53_p3 = scmp.ne.s32.totalorder %s15_s7, %s52_s15  ;;  %p58_p5 = scmp.lt.s32.totalorder %s52_s15, %s52_s15 }
   0xb   :  { %p59_p6 = por %p58_p5, %p57_p4 }
   0xd   :  { %p60_p7 = pnand %p59_p6, %p53_p3 }
   0xf   :  { %63 = shalt.err (!%p60_p7)
}
  0x10   :  { %17 = dma.hbm_to_vmem [thread:$0]  %s126_s0, 256, %s15_s7, [#allocation3]  }
  0x11   :  { %86 = dma.done.wait [#allocation3], 256  }
  0x12   :  { %87 = vsyncadd [#allocation3], 4294967040  ;;  %s91_s18 = smov [#allocation5]   ;;  %v21_v0 = vld [vmem:[#allocation2] sm:$0xff]  ;;  %v22_v1 = vld [vmem:[#allocation2 + $0x8] sm:$0xff] }
  0x13   :  { %s31_s19 = sshll.u32 %s91_s18, 4  ;;  %23 = vst [vmem:[#allocation5] sm:$0xff] %v21_v0  ;;  %24 = vst [vmem:[#allocation5 + $0x8] sm:$0xff] %v22_v1  ;;  %s32_s19 = int_to_ptr.vmem [resolvable:$true] %s31_s19 }
  0x14   :  { %s64_s20 = scalar_lea.vmem %s32_s19, 256  ;;  %p69_p9 = scmp.lt.s32.totalorder %s32_s19, %s32_s19 }
  0x15   :  { %p65_p8 = scmp.ne.s32.totalorder %s32_s19, %s64_s20  ;;  %p70_p10 = scmp.lt.s32.totalorder %s64_s20, %s64_s20 }
  0x17   :  { %p71_p11 = por %p70_p10, %p69_p9 }
  0x19   :  { %p72_p12 = pnand %p71_p11, %p65_p8 }
  0x1b   :  { %75 = shalt.err (!%p72_p12)
}
  0x1c   :  { %s76_s0 = scalar_lea.hbm %s127_s1, 256 }
  0x1d   :  { %p77_p13 = scmp.ne.s32.totalorder %s127_s1, %s76_s0  ;;  %p80_p0 = scmp.lt.u32.totalorder %s76_s0, %s127_s1 }
  0x1f   :  { %p82_p1 = pnand %p80_p0, %p77_p13 }
  0x21   :  { %85 = shalt.err (!%p82_p1)
}
  0x22   :  { %34 = dma.vmem_to_hbm [thread:$0]  %s32_s19, 256, %s127_s1, [#allocation4]  }
  0x23   :  { %88 = dma.done.wait [#allocation4], 256  }
  0x24   :  { %89 = vsyncadd [#allocation4], 4294967040 }
  0x25   :  { %38 = vsyncpa [#allocation3], 1 }
  0x26   :  { %39 = vsyncpa [#allocation4], 1 }

</bundles_post_ra>
